<compile_context>
chip_gen: v7x
topology: tpu7x:2x2x1
jax: 0.10.0
libtpu: 0.0.40
codegen_flags: <defaults>
</compile_context>

<pallas_src>
import numpy as np
import jax
import jax.numpy as jnp
from jax.experimental import pallas as pl
from jax.experimental.pallas import tpu as pltpu

LANE = 128


# ---------------------------------------------------------------------------
# generation-gated budgets
# ---------------------------------------------------------------------------
def _hw_budgets():
    """(vmem_limit_bytes, per-input block bytes).

    v5e/v6e: 128 MiB physical VMEM -> 64 MiB scoped limit, 8 MiB blocks.
    v7x:      64 MiB physical VMEM -> 48 MiB scoped limit, 4 MiB blocks.
    3 arrays x 2 double-buffers x block stays under the limit in both cases.
    Falls back to the conservative v7x numbers if the query is unavailable.
    """
    vmem_cap = 0
    try:
        get_info = getattr(pltpu, "get_tpu_info", None)
        if get_info is not None:
            vmem_cap = int(getattr(get_info(), "vmem_capacity_bytes", 0) or 0)
    except Exception:
        vmem_cap = 0
    if vmem_cap >= (96 << 20):
        return 64 << 20, 8 << 20
    return 48 << 20, 4 << 20


_VMEM_LIMIT, _BLOCK_BYTES = _hw_budgets()


def _sublane_align(itemsize):
    # native tile is (8,128) for 32-bit; sub-32-bit dtypes pack along sublanes.
    return 8 * max(1, 4 // max(1, itemsize))


# ---------------------------------------------------------------------------
# kernels (1-3 VPU ops each; the op is HBM-bound, keep bodies trivial)
# ---------------------------------------------------------------------------
def _add_kernel(a_ref, b_ref, o_ref):
    o_ref[...] = (a_ref[...] + b_ref[...]).astype(o_ref.dtype)


def _gather_add_kernel(sa_ref, va_ref, sb_ref, vb_ref, a_ref, b_ref, o_ref):
    # Every output channel receives from both inputs: mask-free gathered add.
    o_ref[...] = (a_ref[...] + b_ref[...]).astype(o_ref.dtype)


def _make_masked_gather_add_kernel(n_sp):
    def kernel(sa_ref, va_ref, sb_ref, vb_ref, a_ref, b_ref, o_ref):
        c = pl.program_id(0) // n_sp
        zero = jnp.zeros((), o_ref.dtype)
        # vsel (where), not multiply-by-0: unwritten channels stay exactly zero
        # even if the clamped dummy source slab contains NaN/Inf.
        av = jnp.where(va_ref[c] != 0, a_ref[...].astype(o_ref.dtype), zero)
        bv = jnp.where(vb_ref[c] != 0, b_ref[...].astype(o_ref.dtype), zero)
        o_ref[...] = av + bv
    return kernel


def _gather_copy_kernel(src_ref, val_ref, x_ref, o_ref):
    o_ref[...] = x_ref[...].astype(o_ref.dtype)


def _make_masked_gather_copy_kernel(n_sp):
    def kernel(src_ref, val_ref, x_ref, o_ref):
        c = pl.program_id(0) // n_sp
        zero = jnp.zeros((), o_ref.dtype)
        o_ref[...] = jnp.where(val_ref[c] != 0, x_ref[...].astype(o_ref.dtype), zero)
    return kernel


# ---------------------------------------------------------------------------
# static (numpy) channel-table helpers
# ---------------------------------------------------------------------------
def _make_channel_maps(in_channels, out_channels, channels):
    """For each output channel c: which source channel feeds it, and whether
    it is written at all (scatter validity)."""
    src = np.zeros((channels,), dtype=np.int32)   # clamped to 0 when unused
    val = np.zeros((channels,), dtype=np.int32)
    in_c = np.asarray(in_channels).reshape(-1).astype(np.int64)
    out_c = np.asarray(out_channels).reshape(-1).astype(np.int64)
    for j in range(out_c.shape[0]):
        oc = int(out_c[j])
        src[oc] = int(in_c[j])
        val[oc] = 1
    return src, val


def _is_identity(src, val):
    return bool(np.all(val == 1) and np.all(src == np.arange(src.shape[0])))


# ---------------------------------------------------------------------------
# lane-dense spatial layout helpers
# ---------------------------------------------------------------------------
def _lane_dense(x):
    """NCHW -> (B, C, S0, 128) lane-dense view.

    Free contiguous reshape when H*W is a multiple of 128; otherwise pad the
    flattened spatial dim once (one cheap extra pass) instead of making every
    output store a masked narrow (<128-lane) partial vst."""
    B, C, H, W = x.shape
    HW = H * W
    if HW % LANE == 0:
        return x.reshape(B, C, HW // LANE, LANE)
    HWp = pl.cdiv(HW, LANE) * LANE
    x3 = jnp.pad(x.reshape(B, C, HW), ((0, 0), (0, 0), (0, HWp - HW)))
    return x3.reshape(B, C, HWp // LANE, LANE)


def _from_lane_dense(out4, B, channels, H, W):
    HW = H * W
    S0 = out4.shape[2]
    if S0 * LANE == HW:
        return out4.reshape(B, channels, H, W)
    return out4.reshape(B, channels, S0 * LANE)[:, :, :HW].reshape(B, channels, H, W)


def _spatial_tile(B, S0, itemsize):
    """Sublane-aligned spatial tile targeting ~_BLOCK_BYTES per input per step."""
    align = _sublane_align(itemsize)
    ts = _BLOCK_BYTES // max(1, B * LANE * itemsize)
    if ts >= S0:
        return S0
    return min(S0, max(align, (ts // align) * align))


# ---------------------------------------------------------------------------
# pallas_call wrappers
# ---------------------------------------------------------------------------
def _flat_add(a, b, out_dtype):
    """Identity-map fast path: out = a + b over a lane-dense (rows, 128) view."""
    shape = a.shape
    n = a.size
    itemsize = max(jnp.dtype(a.dtype).itemsize, jnp.dtype(b.dtype).itemsize,
                   jnp.dtype(out_dtype).itemsize)
    if n == 0 or n % LANE != 0:
        # Rare for NCHW images.  Any pad/stitch around a pallas_call costs at
        # least one extra full HBM pass; a single fused XLA add costs none.
        return (a + b).astype(out_dtype)

    rows = n // LANE
    a2 = a.reshape(rows, LANE)          # free contiguous reshapes
    b2 = b.reshape(rows, LANE)

    align = _sublane_align(itemsize)
    tr = _BLOCK_BYTES // (LANE * itemsize)      # byte-based block (~4-8 MiB/input)
    if tr >= rows:
        tr = rows
    else:
        tr = max(align, (tr // align) * align)

    out2 = pl.pallas_call(
        _add_kernel,
        out_shape=jax.ShapeDtypeStruct((rows, LANE), out_dtype),
        grid=(pl.cdiv(rows, tr),),
        in_specs=[pl.BlockSpec((tr, LANE), lambda i: (i, 0)),
                  pl.BlockSpec((tr, LANE), lambda i: (i, 0))],
        out_specs=pl.BlockSpec((tr, LANE), lambda i: (i, 0)),
        compiler_params=pltpu.CompilerParams(
            dimension_semantics=("parallel",),
            vmem_limit_bytes=_VMEM_LIMIT),
        cost_estimate=pl.CostEstimate(flops=n, transcendentals=0,
                                      bytes_accessed=3 * n * itemsize),
    )(a2, b2)

    return out2.reshape(shape)


def _gather_scatter_add(input_a, input_b, src_a, val_a, src_b, val_b,
                        channels, out_dtype):
    """General path: data-dependent channel gather/scatter of both inputs + add."""
    B, _, H, W = input_a.shape
    itemsize = max(jnp.dtype(input_a.dtype).itemsize,
                   jnp.dtype(input_b.dtype).itemsize,
                   jnp.dtype(out_dtype).itemsize)
    a4 = _lane_dense(input_a)
    b4 = _lane_dense(input_b)
    S0 = a4.shape[2]
    ts = _spatial_tile(B, S0, itemsize)
    n_sp = pl.cdiv(S0, ts)

    # Static tables -> pick the kernel at trace time: mask-free add when every
    # output channel is written by both sides (common case), masked otherwise.
    all_written = bool(np.all(val_a == 1) and np.all(val_b == 1))
    kernel = _gather_add_kernel if all_written else _make_masked_gather_add_kernel(n_sp)
    # TODO(synk): for channels written by only one input (or none) the partner
    # slab is still DMA'd and discarded; avoiding that needs an aliased
    # pre-zeroed output or a channel-permuted layout.

    # Single flattened "parallel" grid axis (channel-major, spatial-minor):
    # every step is independent and the extent channels*n_sp splits evenly
    # across v7x's 2 TensorCores even when `channels` is small/odd.
    # (Default double-buffering kept; Buffered(3) was judged a low-single-digit
    # win and not worth the lowering-compat risk.)
    grid_spec = pltpu.PrefetchScalarGridSpec(
        num_scalar_prefetch=4,
        grid=(channels * n_sp,),
        in_specs=[
            pl.BlockSpec((B, 1, ts, LANE),
                         lambda i, sa, va, sb, vb: (0, sa[i // n_sp], i % n_sp, 0)),
            pl.BlockSpec((B, 1, ts, LANE),
                         lambda i, sa, va, sb, vb: (0, sb[i // n_sp], i % n_sp, 0)),
        ],
        out_specs=pl.BlockSpec((B, 1, ts, LANE),
                               lambda i, sa, va, sb, vb: (0, i // n_sp, i % n_sp, 0)),
    )

    n_elem = B * channels * S0 * LANE
    out4 = pl.pallas_call(
        kernel,
        out_shape=jax.ShapeDtypeStruct((B, channels, S0, LANE), out_dtype),
        grid_spec=grid_spec,
        compiler_params=pltpu.CompilerParams(
            dimension_semantics=("parallel",),
            vmem_limit_bytes=_VMEM_LIMIT),
        cost_estimate=pl.CostEstimate(flops=3 * n_elem, transcendentals=0,
                                      bytes_accessed=3 * n_elem * itemsize),
    )(jnp.asarray(src_a, jnp.int32), jnp.asarray(val_a, jnp.int32),
      jnp.asarray(src_b, jnp.int32), jnp.asarray(val_b, jnp.int32),
      a4, b4)

    return _from_lane_dense(out4, B, channels, H, W)


def _gather_scatter_one(x, src, val, channels):
    """General path when the other input is empty: gather/scatter of one input."""
    B, _, H, W = x.shape
    out_dtype = x.dtype
    itemsize = jnp.dtype(out_dtype).itemsize
    x4 = _lane_dense(x)
    S0 = x4.shape[2]
    ts = _spatial_tile(B, S0, itemsize)
    n_sp = pl.cdiv(S0, ts)

    all_written = bool(np.all(val == 1))
    kernel = _gather_copy_kernel if all_written else _make_masked_gather_copy_kernel(n_sp)

    grid_spec = pltpu.PrefetchScalarGridSpec(
        num_scalar_prefetch=2,
        grid=(channels * n_sp,),
        in_specs=[pl.BlockSpec((B, 1, ts, LANE),
                               lambda i, sr, vl: (0, sr[i // n_sp], i % n_sp, 0))],
        out_specs=pl.BlockSpec((B, 1, ts, LANE),
                               lambda i, sr, vl: (0, i // n_sp, i % n_sp, 0)),
    )

    n_elem = B * channels * S0 * LANE
    out4 = pl.pallas_call(
        kernel,
        out_shape=jax.ShapeDtypeStruct((B, channels, S0, LANE), out_dtype),
        grid_spec=grid_spec,
        compiler_params=pltpu.CompilerParams(
            dimension_semantics=("parallel",),
            vmem_limit_bytes=_VMEM_LIMIT),
        cost_estimate=pl.CostEstimate(flops=n_elem, transcendentals=0,
                                      bytes_accessed=2 * n_elem * itemsize),
    )(jnp.asarray(src, jnp.int32), jnp.asarray(val, jnp.int32), x4)

    return _from_lane_dense(out4, B, channels, H, W)


# ---------------------------------------------------------------------------
# public forward (== Adder.forward)
# ---------------------------------------------------------------------------
def adder_forward(input_a, input_b,
                  in_channels_a, out_channels_a,
                  in_channels_b, out_channels_b,
                  channels):
    """JAX/Pallas equivalent of Adder.forward for NCHW inputs."""
    # --- glue: torch `add()` empty-tensor special cases (static shapes) ---
    a_empty = 0 in input_a.shape
    b_empty = 0 in input_b.shape
    if a_empty and b_empty:
        return jnp.zeros((0,), jnp.float32)      # torch.Tensor([]) is float32

    src_a, val_a = _make_channel_maps(in_channels_a, out_channels_a, channels)
    src_b, val_b = _make_channel_maps(in_channels_b, out_channels_b, channels)

    ident_a = (not a_empty) and input_a.shape[1] == channels and _is_identity(src_a, val_a)
    ident_b = (not b_empty) and input_b.shape[1] == channels and _is_identity(src_b, val_b)

    if a_empty:
        return input_b if ident_b else _gather_scatter_one(input_b, src_b, val_b, channels)
    if b_empty:
        return input_a if ident_a else _gather_scatter_one(input_a, src_a, val_a, channels)

    out_dtype = jnp.promote_types(input_a.dtype, input_b.dtype)

    # Fast path (default Adder init): identity maps on both sides -> a + b.
    if ident_a and ident_b and input_a.shape == input_b.shape:
        return _flat_add(input_a, input_b, out_dtype)

    return _gather_scatter_add(input_a, input_b, src_a, val_a, src_b, val_b,
                               channels, out_dtype)


# ---------------------------------------------------------------------------
# reference + self-test
# ---------------------------------------------------------------------------
def _np_gather_scatter(x, in_c, out_c, channels):
    B, _, H, W = x.shape
    z = np.zeros((B, channels, H, W), dtype=x.dtype)
    for j in range(len(out_c)):
        z[:, int(out_c[j])] = x[:, int(in_c[j])]
    return z


if __name__ == "__main__":
    B, C, H, W = 2, 4, 16, 16
    key = jax.random.PRNGKey(0)
    ka, kb, kc, kd = jax.random.split(key, 4)
    input_a = jax.random.normal(ka, (B, C, H, W), dtype=jnp.float32)
    input_b = jax.random.normal(kb, (B, C, H, W), dtype=jnp.float32)

    ident = np.arange(C, dtype=np.int64)

    # Case 1: default Adder(channels=C) init -> identity maps -> flat add fast path.
    out1 = jax.block_until_ready(
        adder_forward(input_a, input_b, ident, ident, ident, ident, channels=C))
    ref1 = np.asarray(input_a) + np.asarray(input_b)
    np.testing.assert_allclose(np.asarray(out1), ref1, rtol=1e-6, atol=1e-6)

    # Case 2: partial maps (some output channels unwritten by a) -> masked gather path.
    in_a = np.array([1, 3], dtype=np.int64)
    out_a = np.array([0, 2], dtype=np.int64)
    in_b = np.array([3, 2, 1, 0], dtype=np.int64)
    out_b = np.array([0, 1, 2, 3], dtype=np.int64)
    out2 = jax.block_until_ready(
        adder_forward(input_a, input_b, in_a, out_a, in_b, out_b, channels=C))
    ref2 = (_np_gather_scatter(np.asarray(input_a), in_a, out_a, C)
            + _np_gather_scatter(np.asarray(input_b), in_b, out_b, C))
    np.testing.assert_allclose(np.asarray(out2), ref2, rtol=1e-6, atol=1e-6)

    # Case 3: empty `a` (torch add() special case) -> mask-free single-input gather.
    empty_a = jnp.zeros((B, 0, H, W), dtype=jnp.float32)
    out3 = jax.block_until_ready(
        adder_forward(empty_a, input_b, in_a, out_a, in_b, out_b, channels=C))
    ref3 = _np_gather_scatter(np.asarray(input_b), in_b, out_b, C)
    np.testing.assert_allclose(np.asarray(out3), ref3, rtol=1e-6, atol=1e-6)

    # Case 4: empty `b`, partial map on `a` -> masked single-input gather.
    empty_b = jnp.zeros((B, 0, H, W), dtype=jnp.float32)
    out4 = jax.block_until_ready(
        adder_forward(input_a, empty_b, in_a, out_a, in_b, out_b, channels=C))
    ref4 = _np_gather_scatter(np.asarray(input_a), in_a, out_a, C)
    np.testing.assert_allclose(np.asarray(out4), ref4, rtol=1e-6, atol=1e-6)

    # Case 5: H*W not a multiple of 128 -> lane-dense repack (pad once) path,
    # full permutations on both sides -> mask-free gathered add kernel.
    H2 = W2 = 10
    input_c = jax.random.normal(kc, (B, C, H2, W2), dtype=jnp.float32)
    input_d = jax.random.normal(kd, (B, C, H2, W2), dtype=jnp.float32)
    perm_a = np.array([3, 2, 1, 0], dtype=np.int64)
    out5 = jax.block_until_ready(
        adder_forward(input_c, input_d, perm_a, ident, in_b, out_b, channels=C))
    ref5 = (_np_gather_scatter(np.asarray(input_c), perm_a, ident, C)
            + _np_gather_scatter(np.asarray(input_d), in_b, out_b, C))
    np.testing.assert_allclose(np.asarray(out5), ref5, rtol=1e-6, atol=1e-6)

    print("KERNEL_OK")
</pallas_src>

<mosaic_0001>
module attributes {stable_mosaic.version = 11 : i64} {
  func.func @_add_kernel(%arg0: i32, %arg1: memref<16x128xf32, #tpu.memory_space<vmem>>, %arg2: memref<16x128xf32, #tpu.memory_space<vmem>>, %arg3: memref<16x128xf32, #tpu.memory_space<vmem>>) attributes {dimension_semantics = [#tpu.dimension_semantics<parallel>], iteration_bounds = array<i64: 1>, scalar_prefetch = 0 : i64, scratch_operands = 0 : i64, tpu.core_type = #tpu.core_type<tc>, window_params = [{transform_indices = @transform_0, window_bounds = array<i64: 16, 128>}, {transform_indices = @transform_1, window_bounds = array<i64: 16, 128>}, {transform_indices = @transform_2, window_bounds = array<i64: 16, 128>}]} {
    %c0 = arith.constant 0 : index
    %c0_0 = arith.constant 0 : index
    %0 = vector.load %arg1[%c0, %c0_0] : memref<16x128xf32, #tpu.memory_space<vmem>>, vector<16x128xf32>
    %c0_1 = arith.constant 0 : index
    %c0_2 = arith.constant 0 : index
    %1 = vector.load %arg2[%c0_1, %c0_2] : memref<16x128xf32, #tpu.memory_space<vmem>>, vector<16x128xf32>
    %2 = arith.addf %0, %1 : vector<16x128xf32>
    %c0_3 = arith.constant 0 : index
    %c0_4 = arith.constant 0 : index
    %3 = vector.load %arg3[%c0_3, %c0_4] : memref<16x128xf32, #tpu.memory_space<vmem>>, vector<16x128xf32>
    tpu.vector_store %arg3[%c0_3, %c0_4], %2 {strides = array<i32>} : memref<16x128xf32, #tpu.memory_space<vmem>>, vector<16x128xf32>,
    return
  }
  func.func @transform_0(%arg0: i32) -> (i32, i32) {
    %c0_i32 = arith.constant 0 : i32
    %c0_i32_0 = arith.constant 0 : i32
    return %arg0, %c0_i32 : i32, i32
  }
  func.func @transform_1(%arg0: i32) -> (i32, i32) {
    %c0_i32 = arith.constant 0 : i32
    %c0_i32_0 = arith.constant 0 : i32
    return %arg0, %c0_i32 : i32, i32
  }
  func.func @transform_2(%arg0: i32) -> (i32, i32) {
    %c0_i32 = arith.constant 0 : i32
    %c0_i32_0 = arith.constant 0 : i32
    return %arg0, %c0_i32 : i32, i32
  }
}

</mosaic_0001>

<bundles_post_ra>
// kernel: tpu_custom_call.1
= control target key start
LH: loop header
LB: loop body
LE: loop exit
PB: predicated region body
PF: predicated region fallthrough
CT: control target
= control target key end

     0   :  { %7 = vsyncpa [#allocation3], 0  ;;  %s208_s0 = inlined_call_operand.hbm [shape: f32[16,128], index: 0, kind: input, shape index: {}]   ;;  %s209_s1 = inlined_call_operand.hbm [shape: f32[16,128], index: 1, kind: input, shape index: {}]   ;;  %s210_s2 = inlined_call_operand.hbm [shape: f32[16,128], index: 2, kind: output, shape index: {}]  }
   0x1   :  { %8 = vsyncpa [#allocation6], 0 }
   0x2   :  { %9 = vsyncpa [#allocation4], 0  ;;  %s143_s9 = smov [#allocation2]   ;;  %s71_s13 = scalar_lea.hbm %s208_s0, 256 }
   0x3   :  { %s15_s10 = sshll.u32 %s143_s9, 4  ;;  %p72_p0 = scmp.ne.s32.totalorder %s208_s0, %s71_s13  ;;  %s16_s10 = int_to_ptr.vmem [resolvable:$true] %s15_s10 }
   0x4   :  { %p75_p1 = scmp.lt.u32.totalorder %s71_s13, %s208_s0 }
   0x6   :  { %p77_p2 = pnand %p75_p1, %p72_p0 }
   0x8   :  { %80 = shalt.err (!%p77_p2)
}
   0x9   :  { %s81_s18 = scalar_lea.vmem %s16_s10, 256  ;;  %p86_p4 = scmp.lt.s32.totalorder %s16_s10, %s16_s10 }
   0xa   :  { %p82_p3 = scmp.ne.s32.totalorder %s16_s10, %s81_s18  ;;  %p87_p5 = scmp.lt.s32.totalorder %s81_s18, %s81_s18 }
   0xc   :  { %p88_p6 = por %p87_p5, %p86_p4 }
   0xe   :  { %p89_p7 = pnand %p88_p6, %p82_p3 }
  0x10   :  { %92 = shalt.err (!%p89_p7)
}
  0x11   :  { %s144_s19 = smov 128   ;;  %s145_s20 = smov 8  }
  0x12   :  { %21 = dma.hbm_to_vmem [thread:$0]  %s208_s0, 256, %s16_s10, [#allocation3], %s144_s19, %s144_s19, %s145_s20  }
  0x13   :  { %s146_s23 = smov [#allocation5]   ;;  %s93_s27 = scalar_lea.hbm %s209_s1, 256 }
  0x14   :  { %s27_s24 = sshll.u32 %s146_s23, 4  ;;  %p94_p8 = scmp.ne.s32.totalorder %s209_s1, %s93_s27  ;;  %s28_s24 = int_to_ptr.vmem [resolvable:$true] %s27_s24 }
  0x15   :  { %p97_p9 = scmp.lt.u32.totalorder %s93_s27, %s209_s1 }
  0x17   :  { %p99_p10 = pnand %p97_p9, %p94_p8 }
  0x19   :  { %102 = shalt.err (!%p99_p10)
}
  0x1a   :  { %s103_s4 = scalar_lea.vmem %s28_s24, 256  ;;  %p108_p12 = scmp.lt.s32.totalorder %s28_s24, %s28_s24 }
  0x1b   :  { %p104_p11 = scmp.ne.s32.totalorder %s28_s24, %s103_s4  ;;  %p109_p13 = scmp.lt.s32.totalorder %s103_s4, %s103_s4 }
  0x1d   :  { %p110_p0 = por %p109_p13, %p108_p12 }
  0x1f   :  { %p111_p1 = pnand %p110_p0, %p104_p11 }
  0x21   :  { %114 = shalt.err (!%p111_p1)
}
  0x22   :  { %33 = dma.hbm_to_vmem [thread:$0]  %s209_s1, 256, %s28_s24, [#allocation6], %s144_s19, %s144_s19, %s145_s20  }
  0x23   :  { %137 = dma.done.wait [#allocation3], 256  }
  0x24   :  { %138 = vsyncadd [#allocation3], 4294967040 }
  0x25   :  { %139 = dma.done.wait [#allocation6], 256  }
  0x26   :  { %140 = vsyncadd [#allocation6], 4294967040  ;;  %s147_s6 = smov [#allocation7]   ;;  %v40_v0 = vld [vmem:[#allocation2] sm:$0xff]  ;;  %v42_v1 = vld [vmem:[#allocation5] sm:$0xff] }
  0x27   :  { %s53_s7 = sshll.u32 %s147_s6, 4  ;;  %v41_v2 = vld [vmem:[#allocation2 + $0x8] sm:$0xff]  ;;  %v44_v3 = vadd.f32 %v42_v1, %v40_v0  ;;  %v43_v4 = vld [vmem:[#allocation5 + $0x8] sm:$0xff]  ;;  %s54_s7 = int_to_ptr.vmem [resolvable:$true] %s53_s7 }
  0x28   :  { %v45_v5 = vadd.f32 %v43_v4, %v41_v2  ;;  %s115_s8 = scalar_lea.vmem %s54_s7, 256  ;;  %p120_p3 = scmp.lt.s32.totalorder %s54_s7, %s54_s7 }
  0x29   :  { %46 = vst [vmem:[#allocation7] sm:$0xff] %v44_v3  ;;  %p116_p2 = scmp.ne.s32.totalorder %s54_s7, %s115_s8  ;;  %p121_p4 = scmp.lt.s32.totalorder %s115_s8, %s115_s8 }
  0x2a   :  { %47 = vst [vmem:[#allocation7 + $0x8] sm:$0xff] %v45_v5 }
  0x2b   :  { %p122_p5 = por %p121_p4, %p120_p3 }
  0x2d   :  { %p123_p6 = pnand %p122_p5, %p116_p2 }
  0x2f   :  { %126 = shalt.err (!%p123_p6)
}
  0x30   :  { %s127_s10 = scalar_lea.hbm %s210_s2, 256 }
  0x31   :  { %p128_p7 = scmp.ne.s32.totalorder %s210_s2, %s127_s10  ;;  %p131_p8 = scmp.lt.u32.totalorder %s127_s10, %s210_s2 }
  0x33   :  { %p133_p9 = pnand %p131_p8, %p128_p7 }
  0x35   :  { %136 = shalt.err (!%p133_p9)
}
  0x36   :  { %59 = dma.vmem_to_hbm [thread:$0]  %s54_s7, 256, %s210_s2, [#allocation4], %s144_s19, %s144_s19, %s145_s20  }
  0x37   :  { %141 = dma.done.wait [#allocation4], 256  }
  0x38   :  { %142 = vsyncadd [#allocation4], 4294967040 }
  0x39   :  { %63 = vsyncpa [#allocation3], 1 }
  0x3a   :  { %64 = vsyncpa [#allocation6], 1 }
  0x3b   :  { %65 = vsyncpa [#allocation4], 1 }

</bundles_post_ra>
